<compile_context>
chip_gen: v7x
topology: tpu7x:2x2x1
jax: 0.10.0
libtpu: 0.0.40
codegen_flags: <defaults>
</compile_context>

<pallas_src>
import jax
import jax.numpy as jnp
from jax.experimental import pallas as pl
from jax.experimental.pallas import tpu as pltpu

LANE = 128


def _round_up(n, m):
    return ((n + m - 1) // m) * m


def _pad_axis(a, axis, target):
    pad = target - a.shape[axis]
    if pad == 0:
        return a
    widths = [(0, 0)] * a.ndim
    widths[axis] = (0, pad)
    return jnp.pad(a, widths)


def mlp_kernel(x_ref, w1_ref, b1_ref, w2_ref, b2_ref, w3_ref, b3_ref, o_ref):
    # Layer 1: bf16 operands on the MXU, f32 accumulation; bias+ReLU in f32.
    h1 = jnp.dot(x_ref[...], w1_ref[...], preferred_element_type=jnp.float32)
    h1 = jnp.maximum(h1 + b1_ref[...], 0.0)
    # Layer 2.
    h2 = jnp.dot(h1.astype(w2_ref.dtype), w2_ref[...],
                 preferred_element_type=jnp.float32)
    h2 = jnp.maximum(h2 + b2_ref[...], 0.0)
    # Output layer (lane-dense: padded to 128 columns). No output activation.
    out = jnp.dot(h2.astype(w3_ref.dtype), w3_ref[...],
                  preferred_element_type=jnp.float32)
    o_ref[...] = (out + b3_ref[...]).astype(o_ref.dtype)


def prepare_params(params, compute_dtype=jnp.bfloat16):
    """One-time prep: pad hidden/output feature dims to 128 lanes, cast weights
    to the MXU compute dtype, keep biases f32.  Reuse the result across calls."""
    w1, b1, w2, b2, w3, b3 = (params[k] for k in ("w1", "b1", "w2", "b2", "w3", "b3"))
    in_dim = w1.shape[0]
    h1_dim, h2_dim, out_dim = w1.shape[1], w2.shape[1], w3.shape[1]
    h1_p, h2_p, out_p = (_round_up(d, LANE) for d in (h1_dim, h2_dim, out_dim))
    cdt = compute_dtype
    prep = {
        # in_dim intentionally NOT padded (K=32 is fine on the MXU).
        "w1": _pad_axis(w1, 1, h1_p).astype(cdt),
        "b1": _pad_axis(b1, 1, h1_p).astype(jnp.float32),
        "w2": _pad_axis(_pad_axis(w2, 0, h1_p), 1, h2_p).astype(cdt),
        "b2": _pad_axis(b2, 1, h2_p).astype(jnp.float32),
        "w3": _pad_axis(_pad_axis(w3, 0, h2_p), 1, out_p).astype(cdt),
        "b3": _pad_axis(b3, 1, out_p).astype(jnp.float32),
    }
    meta = dict(in_dim=in_dim, h1_dim=h1_dim, h2_dim=h2_dim, out_dim=out_dim,
                h1_p=h1_p, h2_p=h2_p, out_p=out_p, compute_dtype=cdt)
    return prep, meta


def mlp_forward(x, prep, meta, *, tile_b=None, out_dtype=jnp.float32):
    """x: [B, input_dim] float32. prep/meta: output of prepare_params()."""
    B, in_dim = x.shape
    assert in_dim == meta["in_dim"]
    h1_dim, h2_dim, out_dim = meta["h1_dim"], meta["h2_dim"], meta["out_dim"]
    h1_p, h2_p, out_p = meta["h1_p"], meta["h2_p"], meta["out_p"]
    cdt = meta["compute_dtype"]
    sublane = 16 if jnp.dtype(cdt).itemsize == 2 else 8  # bf16 packs 2 rows/sublane

    if tile_b is None:
        tile_b = 256  # fills 256x256 MXU on v6e/v7x; fine on v5e (4x128x128)
    # Small batch: one whole-batch tile, rounded to the packed sublane multiple.
    tile_b = max(sublane, min(tile_b, _round_up(B, sublane)))

    grid = (pl.cdiv(B, tile_b),)  # partial last block handled by Pallas
    x_c = x.astype(cdt)           # only per-call op on the parameter-free path

    w1_p, b1_p = prep["w1"], prep["b1"]
    w2_p, b2_p = prep["w2"], prep["b2"]
    w3_p, b3_p = prep["w3"], prep["b3"]
    full = lambda a: pl.BlockSpec(a.shape, lambda i: (0,) * a.ndim)

    # Honest cost estimate from real (unpadded) dims.
    c_isz = jnp.dtype(cdt).itemsize
    o_isz = jnp.dtype(out_dtype).itemsize
    flops = 2 * B * (in_dim * h1_dim + h1_dim * h2_dim + h2_dim * out_dim)
    real_weight_bytes = (in_dim * h1_dim + h1_dim * h2_dim + h2_dim * out_dim) * c_isz \
                        + (h1_dim + h2_dim + out_dim) * 4
    bytes_accessed = int(B * in_dim * c_isz + real_weight_bytes + B * out_dim * o_isz)

    # VMEM request sized from the actual working set (+ slack), no artificial floor.
    weight_bytes = sum(int(a.size) * a.dtype.itemsize
                       for a in (w1_p, b1_p, w2_p, b2_p, w3_p, b3_p))
    x_tile_bytes = tile_b * in_dim * c_isz
    out_tile_bytes = tile_b * out_p * o_isz
    inter_bytes = tile_b * (h1_p + h2_p) * 4  # f32 intermediates
    vmem_limit = int(2 * (weight_bytes + x_tile_bytes + out_tile_bytes)
                     + inter_bytes + (4 << 20))

    out_padded = pl.pallas_call(
        mlp_kernel,
        out_shape=jax.ShapeDtypeStruct((B, out_p), out_dtype),
        grid_spec=pltpu.PrefetchScalarGridSpec(
            num_scalar_prefetch=0,
            grid=grid,
            in_specs=[
                pl.BlockSpec((tile_b, in_dim), lambda i: (i, 0)),  # x tile
                full(w1_p), full(b1_p),
                full(w2_p), full(b2_p),
                full(w3_p), full(b3_p),
            ],
            out_specs=pl.BlockSpec((tile_b, out_p), lambda i: (i, 0)),
        ),
        compiler_params=pltpu.CompilerParams(
            dimension_semantics=("parallel",),
            vmem_limit_bytes=vmem_limit,
        ),
        cost_estimate=pl.CostEstimate(
            flops=int(flops), transcendentals=0, bytes_accessed=bytes_accessed),
    )(x_c, w1_p, b1_p, w2_p, b2_p, w3_p, b3_p)

    return out_padded[:, :out_dim].astype(x.dtype)


def init_mlp_params(key, input_dim, output_dim, hidden_layers=(256, 256)):
    """Deterministic init mimicking torch.nn.Linear default (uniform +/- 1/sqrt(fan_in)).
    Weights stored as [in, out] (transpose of torch's [out, in])."""
    params = {}
    dims = [input_dim] + list(hidden_layers) + [output_dim]
    keys = jax.random.split(key, 2 * (len(dims) - 1))
    for li in range(len(dims) - 1):
        fan_in, fan_out = dims[li], dims[li + 1]
        bound = 1.0 / (fan_in ** 0.5)
        w = jax.random.uniform(keys[2 * li], (fan_in, fan_out), jnp.float32, -bound, bound)
        b = jax.random.uniform(keys[2 * li + 1], (1, fan_out), jnp.float32, -bound, bound)
        params[f"w{li + 1}"] = w
        params[f"b{li + 1}"] = b
    return params


def mlp_reference_matched(x, params, compute_dtype=jnp.bfloat16):
    """Reference with the same bf16-operand / f32-accumulate recipe as the kernel."""
    cdt = compute_dtype
    h1 = jnp.maximum(jnp.dot(x.astype(cdt), params["w1"].astype(cdt),
                             preferred_element_type=jnp.float32) + params["b1"], 0.0)
    h2 = jnp.maximum(jnp.dot(h1.astype(cdt), params["w2"].astype(cdt),
                             preferred_element_type=jnp.float32) + params["b2"], 0.0)
    return jnp.dot(h2.astype(cdt), params["w3"].astype(cdt),
                   preferred_element_type=jnp.float32) + params["b3"]


def mlp_reference_f32(x, params):
    # NOTE: kernel intentionally uses bf16 MXU operands (f32 accumulate); exact
    # f32 parity with the torch module would require an f32-operand path.
    h1 = jnp.maximum(x @ params["w1"] + params["b1"], 0.0)
    h2 = jnp.maximum(h1 @ params["w2"] + params["b2"], 0.0)
    return h2 @ params["w3"] + params["b3"]


if __name__ == "__main__":
    key = jax.random.PRNGKey(0)
    kx, kp = jax.random.split(key)

    batch = 16
    input_dim = 32
    output_dim = 4
    hidden_layers = (256, 256)  # module defaults

    x = jax.random.normal(kx, (batch, input_dim), jnp.float32)
    params = init_mlp_params(kp, input_dim, output_dim, hidden_layers)

    # One-time parameter prep (padding + bf16 cast hoisted out of the call path).
    prep, meta = prepare_params(params)

    out = mlp_forward(x, prep, meta)       # single grid step at B=16 (tile_b=16)
    out = jax.block_until_ready(out)

    assert out.shape == (batch, output_dim)
    ref_bf16 = mlp_reference_matched(x, params)
    ref_f32 = mlp_reference_f32(x, params)
    assert jnp.allclose(out, ref_bf16, atol=1e-2, rtol=1e-2)   # matches kernel recipe
    assert jnp.allclose(out, ref_f32, atol=1e-1, rtol=1e-1)    # bf16-vs-f32 sanity

    print("KERNEL_OK")
</pallas_src>

<mosaic_0001>
module attributes {stable_mosaic.version = 11 : i64} {
  func.func @mlp_kernel(%arg0: i32, %arg1: memref<16x32xbf16, #tpu.memory_space<vmem>>, %arg2: memref<32x256xbf16, #tpu.memory_space<vmem>>, %arg3: memref<1x256xf32, #tpu.memory_space<vmem>>, %arg4: memref<256x256xbf16, #tpu.memory_space<vmem>>, %arg5: memref<1x256xf32, #tpu.memory_space<vmem>>, %arg6: memref<256x128xbf16, #tpu.memory_space<vmem>>, %arg7: memref<1x128xf32, #tpu.memory_space<vmem>>, %arg8: memref<16x128xf32, #tpu.memory_space<vmem>>) attributes {dimension_semantics = [#tpu.dimension_semantics<parallel>], iteration_bounds = array<i64: 1>, scalar_prefetch = 0 : i64, scratch_operands = 0 : i64, tpu.core_type = #tpu.core_type<tc>, window_params = [{transform_indices = @transform_0, window_bounds = array<i64: 16, 32>}, {pipeline_mode = #tpu.pipeline_mode<synchronous>, transform_indices = @transform_1, window_bounds = array<i64: 32, 256>}, {pipeline_mode = #tpu.pipeline_mode<synchronous>, transform_indices = @transform_2, window_bounds = array<i64: 1, 256>}, {pipeline_mode = #tpu.pipeline_mode<synchronous>, transform_indices = @transform_3, window_bounds = array<i64: 256, 256>}, {pipeline_mode = #tpu.pipeline_mode<synchronous>, transform_indices = @transform_4, window_bounds = array<i64: 1, 256>}, {pipeline_mode = #tpu.pipeline_mode<synchronous>, transform_indices = @transform_5, window_bounds = array<i64: 256, 128>}, {pipeline_mode = #tpu.pipeline_mode<synchronous>, transform_indices = @transform_6, window_bounds = array<i64: 1, 128>}, {transform_indices = @transform_7, window_bounds = array<i64: 16, 128>}]} {
    %c0 = arith.constant 0 : index
    %c0_0 = arith.constant 0 : index
    %0 = vector.load %arg1[%c0, %c0_0] : memref<16x32xbf16, #tpu.memory_space<vmem>>, vector<16x32xbf16>
    %c0_1 = arith.constant 0 : index
    %c0_2 = arith.constant 0 : index
    %1 = vector.load %arg2[%c0_1, %c0_2] : memref<32x256xbf16, #tpu.memory_space<vmem>>, vector<32x256xbf16>
    %cst = arith.constant dense<0.000000e+00> : vector<16x256xf32>
    %2 = tpu.matmul %0, %1, %cst {dimension_numbers = #tpu.dot_dimension_numbers<[1], [0], [0], [1], [0, 0, 1, 1], [], []>} : vector<16x32xbf16>, vector<32x256xbf16>, vector<16x256xf32> -> vector<16x256xf32>
    %c0_3 = arith.constant 0 : index
    %c0_4 = arith.constant 0 : index
    %3 = vector.load %arg3[%c0_3, %c0_4] : memref<1x256xf32, #tpu.memory_space<vmem>>, vector<1x256xf32>
    %4 = vector.broadcast %3 : vector<1x256xf32> to vector<16x256xf32>
    %5 = arith.addf %2, %4 : vector<16x256xf32>
    %cst_5 = arith.constant 0.000000e+00 : f32
    %6 = vector.broadcast %cst_5 : f32 to vector<16x256xf32>
    %7 = arith.maximumf %5, %6 : vector<16x256xf32>
    %8 = arith.truncf %7 : vector<16x256xf32> to vector<16x256xbf16>
    %c0_6 = arith.constant 0 : index
    %c0_7 = arith.constant 0 : index
    %9 = vector.load %arg4[%c0_6, %c0_7] : memref<256x256xbf16, #tpu.memory_space<vmem>>, vector<256x256xbf16>
    %cst_8 = arith.constant dense<0.000000e+00> : vector<16x256xf32>
    %10 = tpu.matmul %8, %9, %cst_8 {dimension_numbers = #tpu.dot_dimension_numbers<[1], [0], [0], [1], [0, 0, 1, 1], [], []>} : vector<16x256xbf16>, vector<256x256xbf16>, vector<16x256xf32> -> vector<16x256xf32>
    %c0_9 = arith.constant 0 : index
    %c0_10 = arith.constant 0 : index
    %11 = vector.load %arg5[%c0_9, %c0_10] : memref<1x256xf32, #tpu.memory_space<vmem>>, vector<1x256xf32>
    %12 = vector.broadcast %11 : vector<1x256xf32> to vector<16x256xf32>
    %13 = arith.addf %10, %12 : vector<16x256xf32>
    %cst_11 = arith.constant 0.000000e+00 : f32
    %14 = vector.broadcast %cst_11 : f32 to vector<16x256xf32>
    %15 = arith.maximumf %13, %14 : vector<16x256xf32>
    %16 = arith.truncf %15 : vector<16x256xf32> to vector<16x256xbf16>
    %c0_12 = arith.constant 0 : index
    %c0_13 = arith.constant 0 : index
    %17 = vector.load %arg6[%c0_12, %c0_13] : memref<256x128xbf16, #tpu.memory_space<vmem>>, vector<256x128xbf16>
    %cst_14 = arith.constant dense<0.000000e+00> : vector<16x128xf32>
    %18 = tpu.matmul %16, %17, %cst_14 {dimension_numbers = #tpu.dot_dimension_numbers<[1], [0], [0], [1], [0, 0, 1, 1], [], []>} : vector<16x256xbf16>, vector<256x128xbf16>, vector<16x128xf32> -> vector<16x128xf32>
    %c0_15 = arith.constant 0 : index
    %c0_16 = arith.constant 0 : index
    %19 = vector.load %arg7[%c0_15, %c0_16] : memref<1x128xf32, #tpu.memory_space<vmem>>, vector<1x128xf32>
    %20 = vector.broadcast %19 : vector<1x128xf32> to vector<16x128xf32>
    %21 = arith.addf %18, %20 : vector<16x128xf32>
    %c0_17 = arith.constant 0 : index
    %c0_18 = arith.constant 0 : index
    %22 = vector.load %arg8[%c0_17, %c0_18] : memref<16x128xf32, #tpu.memory_space<vmem>>, vector<16x128xf32>
    tpu.vector_store %arg8[%c0_17, %c0_18], %21 {strides = array<i32>} : memref<16x128xf32, #tpu.memory_space<vmem>>, vector<16x128xf32>,
    return
  }
  func.func @transform_0(%arg0: i32) -> (i32, i32) {
    %c0_i32 = arith.constant 0 : i32
    %c0_i32_0 = arith.constant 0 : i32
    return %arg0, %c0_i32 : i32, i32
  }
  func.func @transform_1(%arg0: i32) -> (i32, i32) {
    %c0_i32 = arith.constant 0 : i32
    %c0_i32_0 = arith.constant 0 : i32
    %c0_i32_1 = arith.constant 0 : i32
    return %c0_i32, %c0_i32_0 : i32, i32
  }
  func.func @transform_2(%arg0: i32) -> (i32, i32) {
    %c0_i32 = arith.constant 0 : i32
    %c0_i32_0 = arith.constant 0 : i32
    %c0_i32_1 = arith.constant 0 : i32
    return %c0_i32, %c0_i32_0 : i32, i32
  }
  func.func @transform_3(%arg0: i32) -> (i32, i32) {
    %c0_i32 = arith.constant 0 : i32
    %c0_i32_0 = arith.constant 0 : i32
    %c0_i32_1 = arith.constant 0 : i32
    return %c0_i32, %c0_i32_0 : i32, i32
  }
  func.func @transform_4(%arg0: i32) -> (i32, i32) {
    %c0_i32 = arith.constant 0 : i32
    %c0_i32_0 = arith.constant 0 : i32
    %c0_i32_1 = arith.constant 0 : i32
    return %c0_i32, %c0_i32_0 : i32, i32
  }
  func.func @transform_5(%arg0: i32) -> (i32, i32) {
    %c0_i32 = arith.constant 0 : i32
    %c0_i32_0 = arith.constant 0 : i32
    %c0_i32_1 = arith.constant 0 : i32
    return %c0_i32, %c0_i32_0 : i32, i32
  }
  func.func @transform_6(%arg0: i32) -> (i32, i32) {
    %c0_i32 = arith.constant 0 : i32
    %c0_i32_0 = arith.constant 0 : i32
    %c0_i32_1 = arith.constant 0 : i32
    return %c0_i32, %c0_i32_0 : i32, i32
  }
  func.func @transform_7(%arg0: i32) -> (i32, i32) {
    %c0_i32 = arith.constant 0 : i32
    %c0_i32_0 = arith.constant 0 : i32
    return %arg0, %c0_i32 : i32, i32
  }
}

</mosaic_0001>

<bundles_post_ra>
// kernel: tpu_custom_call.1
= control target key start
LH: loop header
LB: loop body
LE: loop exit
PB: predicated region body
PF: predicated region fallthrough
CT: control target
= control target key end

     0   :  { %12 = vsyncpa [#allocation3], 0  ;;  %s1046_s0 = inlined_call_operand.hbm [shape: bf16[16,32], index: 0, kind: input, shape index: {}]   ;;  %s1047_s1 = inlined_call_operand.hbm [shape: bf16[32,256], index: 1, kind: input, shape index: {}]   ;;  %s1048_s2 = inlined_call_operand.vmem [shape: f32[1,256], index: 2, kind: input, shape index: {}]   ;;  %s1049_s3 = inlined_call_operand.hbm [shape: bf16[256,256], index: 3, kind: input, shape index: {}]   ;;  %s1050_s4 = inlined_call_operand.vmem [shape: f32[1,256], index: 4, kind: input, shape index: {}]   ;;  %s1051_s5 = inlined_call_operand.hbm [shape: bf16[256,128], index: 5, kind: input, shape index: {}]   ;;  %s1052_s6 = inlined_call_operand.vmem [shape: f32[1,128], index: 6, kind: input, shape index: {}]   ;;  %s1053_s7 = inlined_call_operand.hbm [shape: f32[16,128], index: 7, kind: output, shape index: {}]  }
   0x1   :  { %13 = vsyncpa [#allocation6], 0 }
   0x2   :  { %14 = vsyncpa [#allocation9], 0 }
   0x3   :  { %15 = vsyncpa [#allocation4], 0  ;;  %s905_s24 = smov [#allocation5]   ;;  %s787_s28 = scalar_lea.hbm %s1047_s1, 512 }
   0x4   :  { %s33_s25 = sshll.u32 %s905_s24, 4  ;;  %p788_p0 = scmp.ne.s32.totalorder %s1047_s1, %s787_s28  ;;  %s34_s25 = int_to_ptr.vmem [resolvable:$true] %s33_s25 }
   0x5   :  { %p791_p1 = scmp.lt.u32.totalorder %s787_s28, %s1047_s1 }
   0x7   :  { %p793_p2 = pnand %p791_p1, %p788_p0 }
   0x9   :  { %796 = shalt.err (!%p793_p2)
}
   0xa   :  { %s797_s10 = scalar_lea.vmem %s34_s25, 512  ;;  %p802_p4 = scmp.lt.s32.totalorder %s34_s25, %s34_s25 }
   0xb   :  { %p798_p3 = scmp.ne.s32.totalorder %s34_s25, %s797_s10  ;;  %p803_p5 = scmp.lt.s32.totalorder %s797_s10, %s797_s10 }
   0xd   :  { %p804_p6 = por %p803_p5, %p802_p4 }
   0xf   :  { %p805_p7 = pnand %p804_p6, %p798_p3 }
  0x11   :  { %808 = shalt.err (!%p805_p7)
}
  0x12   :  { %s906_s11 = smov 128   ;;  %s907_s12 = smov 8  }
  0x13   :  { %39 = dma.hbm_to_vmem [thread:$0]  %s1047_s1, 512, %s34_s25, [#allocation6], %s906_s11, %s906_s11, %s907_s12  }
  0x14   :  { %s908_s15 = smov [#allocation2]   ;;  %s809_s19 = scalar_lea.hbm %s1046_s0, 128 }
  0x15   :  { %s21_s16 = sshll.u32 %s908_s15, 4  ;;  %p810_p8 = scmp.ne.s32.totalorder %s1046_s0, %s809_s19  ;;  %s22_s16 = int_to_ptr.vmem [resolvable:$true] %s21_s16 }
  0x16   :  { %p813_p9 = scmp.lt.u32.totalorder %s809_s19, %s1046_s0 }
  0x18   :  { %p815_p10 = pnand %p813_p9, %p810_p8 }
  0x1a   :  { %818 = shalt.err (!%p815_p10)
}
  0x1b   :  { %s819_s24 = scalar_lea.vmem %s22_s16, 128  ;;  %p824_p12 = scmp.lt.s32.totalorder %s22_s16, %s22_s16 }
  0x1c   :  { %p820_p11 = scmp.ne.s32.totalorder %s22_s16, %s819_s24  ;;  %p825_p13 = scmp.lt.s32.totalorder %s819_s24, %s819_s24 }
  0x1e   :  { %p826_p0 = por %p825_p13, %p824_p12 }
  0x20   :  { %p827_p1 = pnand %p826_p0, %p820_p11 }
  0x22   :  { %830 = shalt.err (!%p827_p1)
}
  0x23   :  { %s909_s1 = smov 64   ;;  %s910_s25 = smov 4  }
  0x24   :  { %27 = dma.hbm_to_vmem [thread:$0]  %s1046_s0, 128, %s22_s16, [#allocation3], %s909_s1, %s909_s1, %s910_s25  }
  0x25   :  { %s911_s28 = smov [#allocation7]   ;;  %s912_s30 = smov [#allocation8]  }
  0x26   :  { %s47_s29 = sshll.u32 %s911_s28, 4  ;;  %s61_s8 = sshll.u32 %s912_s30, 4  ;;  %s48_s29 = int_to_ptr.vmem [resolvable:$true] %s47_s29  ;;  %s985_s8 = int_to_ptr.vmem [resolvable:$true] %s61_s8 }
  0x27   :  { %s831_s13 = scalar_lea.hbm %s1049_s3, 4096 }
  0x28   :  { %p832_p2 = scmp.ne.s32.totalorder %s1049_s3, %s831_s13  ;;  %p835_p3 = scmp.lt.u32.totalorder %s831_s13, %s1049_s3 }
  0x2a   :  { %p837_p4 = pnand %p835_p3, %p832_p2 }
  0x2c   :  { %840 = shalt.err (!%p837_p4)
}
  0x2d   :  { %s841_s0 = scalar_lea.vmem %s48_s29, 4096  ;;  %p846_p6 = scmp.lt.s32.totalorder %s48_s29, %s48_s29 }
  0x2e   :  { %p842_p5 = scmp.ne.s32.totalorder %s48_s29, %s841_s0  ;;  %p847_p7 = scmp.lt.s32.totalorder %s841_s0, %s841_s0 }
  0x30   :  { %p848_p8 = por %p847_p7, %p846_p6 }
  0x32   :  { %p849_p9 = pnand %p848_p8, %p842_p5 }
  0x34   :  { %852 = shalt.err (!%p849_p9)
}
  0x35   :  { %53 = dma.hbm_to_vmem [thread:$0]  %s1049_s3, 4096, %s48_s29, [#allocation6], %s906_s11, %s906_s11, %s907_s12  }
  0x36   :  { %s853_s22 = scalar_lea.hbm %s1051_s5, 2048 }
  0x37   :  { %p854_p10 = scmp.ne.s32.totalorder %s1051_s5, %s853_s22  ;;  %p857_p11 = scmp.lt.u32.totalorder %s853_s22, %s1051_s5 }
  0x39   :  { %p859_p12 = pnand %p857_p11, %p854_p10 }
  0x3b   :  { %862 = shalt.err (!%p859_p12)
}
  0x3c   :  { %s863_s28 = scalar_lea.vmem %s985_s8, 2048  ;;  %p868_p0 = scmp.lt.s32.totalorder %s985_s8, %s985_s8 }
  0x3d   :  { %p864_p13 = scmp.ne.s32.totalorder %s985_s8, %s863_s28  ;;  %p869_p1 = scmp.lt.s32.totalorder %s863_s28, %s863_s28 }
  0x3f   :  { %p870_p2 = por %p869_p1, %p868_p0 }
  0x41   :  { %p871_p3 = pnand %p870_p2, %p864_p13 }
  0x43   :  { %874 = shalt.err (!%p871_p3)
}
  0x44   :  { %67 = dma.hbm_to_vmem [thread:$0]  %s1051_s5, 2048, %s985_s8, [#allocation9], %s909_s1, %s909_s1, %s910_s25  }
  0x45   :  { %897 = dma.done.wait [#allocation3], 128  }
  0x46   :  { %898 = vsyncadd [#allocation3], 4294967168 }
  0x47   :  { %899 = dma.done.wait [#allocation6], 4608  }
  0x48   :  { %900 = vsyncadd [#allocation6], 4294962688 }
  0x49   :  { %901 = dma.done.wait [#allocation9], 2048  }
  0x4a   :  { %902 = vsyncadd [#allocation9], 4294965248  ;;  %v913_v0 = vmov 0   ;;  %v716_v1 = vld [vmem:[#allocation5 + $0x4] ss:$8 sps:$4 sm:$0xff]   ;;  %v722_v8 = vld [vmem:[#allocation2] sm:$0xff]   ;;  %v91_v49 = vlaneseq }
  0x4b   :  { %162 = vmatprep.mubr.bf16.mxu0 %v913_v0  ;;  %v718_v2 = vld [vmem:[#allocation5] ss:$8 sps:$4 sm:$0xff]   ;;  %130 = vmatprep.subr.bf16.mxu0 %v716_v1  ;;  %v719_v3 = vld [vmem:[#allocation5 + $0x14] ss:$8 sps:$4 sm:$0xff]   ;;  %v721_v4 = vld [vmem:[#allocation5 + $0x10] ss:$8 sps:$4 sm:$0xff]  }
  0x4c   :  { %131 = vmatpush1.bf16.msra.mxu0 %v718_v2  ;;  %v723_v5 = vld [vmem:[#allocation7 + $0x4] ss:$8 sps:$4 sm:$0xff]   ;;  %v725_v6 = vld [vmem:[#allocation7] ss:$8 sps:$4 sm:$0xff]   ;;  %v726_v7 = vld [vmem:[#allocation7 + $0x14] ss:$8 sps:$4 sm:$0xff]  }
  0x4d   :  { %132 = vmatprep.subr.bf16.mxu0 %v719_v3  ;;  %383 = vmatprep.subr.bf16.mxu1 %v723_v5  ;;  %vm126_vm0 = vcmask 261120   ;;  %v728_v9 = vld [vmem:[#allocation7 + $0x10] ss:$8 sps:$4 sm:$0xff]   ;;  %v729_v10 = vld [vmem:[#allocation7 + $0x24] ss:$8 sps:$4 sm:$0xff]   ;;  %v92_v50 = vshrl.u32 %v91_v49, 7 }
  0x4e   :  { %384 = vmatpush1.bf16.msra.mxu1 %v725_v6  ;;  %v731_v11 = vld [vmem:[#allocation7 + $0x20] ss:$8 sps:$4 sm:$0xff]   ;;  %v732_v12 = vld [vmem:[#allocation7 + $0x34] ss:$8 sps:$4 sm:$0xff]   ;;  %v734_v13 = vld [vmem:[#allocation7 + $0x30] ss:$8 sps:$4 sm:$0xff]  }
  0x4f   :  { %385 = vmatprep.subr.bf16.mxu1 %v726_v7  ;;  %v735_v14 = vld [vmem:[#allocation7 + $0x44] ss:$8 sps:$4 sm:$0xff]   ;;  %v737_v15 = vld [vmem:[#allocation7 + $0x40] ss:$8 sps:$4 sm:$0xff]   ;;  %v738_v16 = vld [vmem:[#allocation7 + $0x54] ss:$8 sps:$4 sm:$0xff]  }
  0x50   :  { %133 = vmatpush1.bf16.msra.mxu0 %v721_v4  ;;  %v740_v17 = vld [vmem:[#allocation7 + $0x50] ss:$8 sps:$4 sm:$0xff]   ;;  %v741_v18 = vld [vmem:[#allocation7 + $0x64] ss:$8 sps:$4 sm:$0xff]   ;;  %v743_v19 = vld [vmem:[#allocation7 + $0x60] ss:$8 sps:$4 sm:$0xff]  }
  0x51   :  { %v744_v20 = vld [vmem:[#allocation7 + $0x74] ss:$8 sps:$4 sm:$0xff]   ;;  %v746_v21 = vld [vmem:[#allocation7 + $0x70] ss:$8 sps:$4 sm:$0xff]   ;;  %v747_v22 = vld [vmem:[#allocation7 + $0x84] ss:$8 sps:$4 sm:$0xff]  }
  0x52   :  { %386 = vmatpush1.bf16.msra.mxu1 %v728_v9  ;;  %v749_v23 = vld [vmem:[#allocation7 + $0x80] ss:$8 sps:$4 sm:$0xff]   ;;  %v750_v24 = vld [vmem:[#allocation7 + $0x94] ss:$8 sps:$4 sm:$0xff]   ;;  %v752_v25 = vld [vmem:[#allocation7 + $0x90] ss:$8 sps:$4 sm:$0xff]  }
  0x53   :  { %634 = vmatmul.mubr.msk.bf16.vlgmr.msra.gmra.mrb[0].mxu0 %vm126_vm0, %v722_v8  ;;  %387 = vmatprep.subr.bf16.mxu1 %v729_v10  ;;  %v753_v26 = vld [vmem:[#allocation7 + $0xa4] ss:$8 sps:$4 sm:$0xff]   ;;  %v755_v27 = vld [vmem:[#allocation7 + $0xa0] ss:$8 sps:$4 sm:$0xff]   ;;  %v756_v28 = vld [vmem:[#allocation7 + $0xb4] ss:$8 sps:$4 sm:$0xff]  }
  0x54   :  { %v758_v29 = vld [vmem:[#allocation7 + $0xb0] ss:$8 sps:$4 sm:$0xff]   ;;  %v759_v30 = vld [vmem:[#allocation7 + $0xc4] ss:$8 sps:$4 sm:$0xff]   ;;  %v761_v31 = vld [vmem:[#allocation7 + $0xc0] ss:$8 sps:$4 sm:$0xff]  }
  0x55   :  { %v762_v32 = vld [vmem:[#allocation7 + $0xd4] ss:$8 sps:$4 sm:$0xff]   ;;  %v764_v33 = vld [vmem:[#allocation7 + $0xd0] ss:$8 sps:$4 sm:$0xff]   ;;  %v765_v34 = vld [vmem:[#allocation7 + $0xe4] ss:$8 sps:$4 sm:$0xff]  }
  0x56   :  { %388 = vmatpush1.bf16.msra.mxu1 %v731_v11  ;;  %v767_v35 = vld [vmem:[#allocation7 + $0xe0] ss:$8 sps:$4 sm:$0xff]   ;;  %v768_v36 = vld [vmem:[#allocation7 + $0xf4] ss:$8 sps:$4 sm:$0xff]   ;;  %v770_v37 = vld [vmem:[#allocation7 + $0xf0] ss:$8 sps:$4 sm:$0xff]  }
  0x57   :  { %389 = vmatprep.subr.bf16.mxu1 %v732_v12  ;;  %v771_v38 = vld [vmem:[#allocation8 + $0x40] sm:$0xff]   ;;  %v773_v40 = vld [vmem:[#allocation8 + $0x48] sm:$0xff]   ;;  %v775_v42 = vld [vmem:[#allocation8 + $0x50] sm:$0xff]   ;;  %v93_v51 = vsub.s32 0, %v92_v50  ;;  %v97_v53 = vsub.s32 1, %v92_v50  ;;  %s914_s8 = smov [#allocation10]  }
  0x58   :  { %v772_v39 = vld [vmem:[#allocation8] sm:$0xff]   ;;  %684 = vmatprep.subr.bf16.mxu0 %v771_v38  ;;  %v774_v41 = vld [vmem:[#allocation8 + $0x8] sm:$0xff]   ;;  %v776_v43 = vld [vmem:[#allocation8 + $0x10] sm:$0xff]   ;;  %s615_s9 = sshll.u32 %s914_s8, 4  ;;  %s616_s9 = int_to_ptr.vmem [resolvable:$true] %s615_s9 }
  0x59   :  { %685 = vmatpush3.bf16.msra.mxu0 %v772_v39  ;;  %v777_v44 = vld [vmem:[#allocation8 + $0x58] sm:$0xff]   ;;  %v779_v46 = vld [vmem:[#allocation8 + $0x60] sm:$0xff]   ;;  %v781_v48 = vld [vmem:[#allocation8 + $0x68] sm:$0xff]   ;;  %s875_s10 = scalar_lea.vmem %s616_s9, 256  ;;  %p880_p5 = scmp.lt.s32.totalorder %s616_s9, %s616_s9 }
  0x5a   :  { %390 = vmatpush1.bf16.msra.mxu1 %v734_v13  ;;  %686 = vmatprep.subr.bf16.mxu0 %v773_v40  ;;  %v778_v45 = vld [vmem:[#allocation8 + $0x18] sm:$0xff]   ;;  %v780_v47 = vld [vmem:[#allocation8 + $0x20] sm:$0xff]   ;;  %v782_v6 = vld [vmem:[#allocation8 + $0x28] sm:$0xff]   ;;  %p876_p4 = scmp.ne.s32.totalorder %s616_s9, %s875_s10  ;;  %p881_p6 = scmp.lt.s32.totalorder %s875_s10, %s875_s10 }
  0x5b   :  { %391 = vmatprep.subr.bf16.mxu1 %v735_v14  ;;  %v89_v52 = vld [vmem:[%s1048_s2] sm:$0x3]  ;;  %v783_v7 = vld [vmem:[#allocation8 + $0x70] sm:$0xff]  }
  0x5c   :  { %v94_v54 = vrot.slane %v89_v52, %v93_v51  ;;  %v98_v55 = vrot.slane %v89_v52, %v97_v53  ;;  %v784_v8 = vld [vmem:[#allocation8 + $0x30] sm:$0xff]   ;;  %v785_v9 = vld [vmem:[#allocation8 + $0x78] sm:$0xff]   ;;  %p882_p7 = por %p881_p6, %p880_p5 }
  0x5d   :  { %687 = vmatpush3.bf16.msra.mxu0 %v774_v41  ;;  %v786_v10 = vld [vmem:[#allocation8 + $0x38] sm:$0xff]  }
  0x5e   :  { %392 = vmatpush1.bf16.msra.mxu1 %v737_v15  ;;  %688 = vmatprep.subr.bf16.mxu0 %v775_v42  ;;  %v211_v11 = vld [vmem:[%s1050_s4] sm:$0x3]  ;;  %p883_p8 = pnand %p882_p7, %p876_p4 }
  0x5f   :  { %393 = vmatprep.subr.bf16.mxu1 %v738_v16  ;;  %v216_v12 = vrot.slane %v211_v11, %v93_v51  ;;  %v220_v13 = vrot.slane %v211_v11, %v97_v53 }
  0x61   :  { %689 = vmatpush3.bf16.msra.mxu0 %v776_v43 }
  0x62   :  { %394 = vmatpush1.bf16.msra.mxu1 %v740_v17  ;;  %690 = vmatprep.subr.bf16.mxu0 %v777_v44 }
  0x63   :  { %395 = vmatprep.subr.bf16.mxu1 %v741_v18 }
  0x65   :  { %691 = vmatpush3.bf16.msra.mxu0 %v778_v45 }
  0x66   :  { %396 = vmatpush1.bf16.msra.mxu1 %v743_v19  ;;  %692 = vmatprep.subr.bf16.mxu0 %v779_v46 }
  0x67   :  { %397 = vmatprep.subr.bf16.mxu1 %v744_v20 }
  0x69   :  { %693 = vmatpush3.bf16.msra.mxu0 %v780_v47 }
  0x6a   :  { %398 = vmatpush1.bf16.msra.mxu1 %v746_v21  ;;  %694 = vmatprep.subr.bf16.mxu0 %v781_v48 }
  0x6b   :  { %399 = vmatprep.subr.bf16.mxu1 %v747_v22 }
  0x6d   :  { %695 = vmatpush3.bf16.msra.mxu0 %v782_v6 }
  0x6e   :  { %400 = vmatpush1.bf16.msra.mxu1 %v749_v23  ;;  %696 = vmatprep.subr.bf16.mxu0 %v783_v7 }
  0x6f   :  { %401 = vmatprep.subr.bf16.mxu1 %v750_v24 }
  0x71   :  { %697 = vmatpush3.bf16.msra.mxu0 %v784_v8 }
  0x72   :  { %402 = vmatpush1.bf16.msra.mxu1 %v752_v25  ;;  %698 = vmatprep.subr.bf16.mxu0 %v785_v9 }
  0x73   :  { %403 = vmatprep.subr.bf16.mxu1 %v753_v26 }
  0x75   :  { %699 = vmatpush3.bf16.msra.mxu0 %v786_v10 }
  0x76   :  { %404 = vmatpush1.bf16.msra.mxu1 %v755_v27 }
  0x77   :  { %405 = vmatprep.subr.bf16.mxu1 %v756_v28 }
  0x7a   :  { %406 = vmatpush1.bf16.msra.mxu1 %v758_v29  ;;  %v667_v29 = vld [vmem:[%s1052_s6] ss:$0 sm:$0xff] }
  0x7b   :  { %407 = vmatprep.subr.bf16.mxu1 %v759_v30 }
  0x7e   :  { %408 = vmatpush1.bf16.msra.mxu1 %v761_v31 }
  0x7f   :  { %409 = vmatprep.subr.bf16.mxu1 %v762_v32 }
  0x82   :  { %410 = vmatpush1.bf16.msra.mxu1 %v764_v33 }
  0x83   :  { %411 = vmatprep.subr.bf16.mxu1 %v765_v34 }
  0x86   :  { %412 = vmatpush1.bf16.msra.mxu1 %v767_v35 }
  0x87   :  { %413 = vmatprep.subr.bf16.mxu1 %v768_v36 }
  0x8a   :  { %414 = vmatpush1.bf16.msra.mxu1 %v770_v37 }
 0x126   :  { %v164_v56 = vpop.f32.mrb[0].mxu0 }
 0x127   :  { %v165_v57 = vadd.f32 %v164_v56, %v94_v54  ;;  %v166_v58 = vpop.f32.mrb[1].mxu0 }
 0x128   :  { %v167_v59 = vadd.f32 %v166_v58, %v98_v55  ;;  %v168_v60 = vpop.f32.mrb[2].mxu0 }
 0x129   :  { %v169_v61 = vadd.f32 %v168_v60, %v94_v54  ;;  %v170_v62 = vpop.f32.mrb[3].mxu0  ;;  %v173_v0 = vmax.f32 %v165_v57, 0.0 }
 0x12a   :  { %v171_v63 = vadd.f32 %v170_v62, %v98_v55  ;;  %v174_v2 = vmax.f32 %v167_v59, 0.0 }
 0x12b   :  { %v175_v1 = vmax.f32 %v169_v61, 0.0 }
 0x12c   :  { %v176_v3 = vmax.f32 %v171_v63, 0.0 }
 0x12d   :  { %v177_v4 = vpack.c.bf16 %v175_v1, %v173_v0 }
 0x12e   :  { %v178_v5 = vpack.c.bf16 %v176_v3, %v174_v2 }
 0x130   :  { %415 = vmatprep.mubr.bf16.mxu1 %v178_v5 }
 0x131   :  { %416 = vmatmul.mubr.bf16.vlgmr.msra.gmra.mrb[0].mxu1 %v177_v4 }
 0x204   :  { %v417_v14 = vpop.f32.mrb[0].mxu1 }
 0x205   :  { %v418_v15 = vadd.f32 %v417_v14, %v216_v12  ;;  %v419_v16 = vpop.f32.mrb[1].mxu1 }
 0x206   :  { %v420_v17 = vadd.f32 %v419_v16, %v220_v13  ;;  %v421_v18 = vpop.f32.mrb[2].mxu1 }
 0x207   :  { %v422_v19 = vadd.f32 %v421_v18, %v216_v12  ;;  %v423_v20 = vpop.f32.mrb[3].mxu1  ;;  %v426_v22 = vmax.f32 %v418_v15, 0.0 }
 0x208   :  { %v424_v21 = vadd.f32 %v423_v20, %v220_v13  ;;  %v427_v24 = vmax.f32 %v420_v17, 0.0 }
 0x209   :  { %v428_v23 = vmax.f32 %v422_v19, 0.0 }
 0x20a   :  { %v429_v25 = vmax.f32 %v424_v21, 0.0 }
 0x20b   :  { %v430_v26 = vpack.c.bf16 %v428_v23, %v426_v22 }
 0x20c   :  { %v431_v27 = vpack.c.bf16 %v429_v25, %v427_v24 }
 0x20e   :  { %599 = vmatprep.mubr.bf16.mxu0 %v431_v27 }
 0x20f   :  { %600 = vmatmul.mubr.bf16.vlgmr.msra.gmra.mrb[4].mxu0 %v430_v26 }
 0x2e2   :  { %v700_v28 = vpop.f32.mrb[4].mxu0 }
 0x2e3   :  { %v701_v30 = vpop.f32.mrb[5].mxu0 }
 0x2e4   :  { %v702_v31 = vadd.f32 %v701_v30, %v700_v28  ;;  %v703_v32 = vpop.f32.mrb[6].mxu0 }
 0x2e5   :  { %v704_v33 = vpop.f32.mrb[7].mxu0 }
 0x2e6   :  { %v602_v34 = vadd.f32 %v702_v31, %v667_v29  ;;  %v705_v35 = vadd.f32 %v704_v33, %v703_v32 }
 0x2e8   :  { %608 = vst [vmem:[#allocation10] sm:$0xff] %v602_v34  ;;  %v605_v36 = vadd.f32 %v705_v35, %v667_v29 }
 0x2ea   :  { %609 = vst [vmem:[#allocation10 + $0x8] sm:$0xff] %v605_v36 }
 0x2eb   :  { %886 = shalt.err (!%p883_p8)
}
 0x2ec   :  { %s887_s14 = scalar_lea.hbm %s1053_s7, 256 }
 0x2ed   :  { %p888_p9 = scmp.ne.s32.totalorder %s1053_s7, %s887_s14  ;;  %p891_p10 = scmp.lt.u32.totalorder %s887_s14, %s1053_s7 }
 0x2ef   :  { %p893_p11 = pnand %p891_p10, %p888_p9 }
 0x2f1   :  { %896 = shalt.err (!%p893_p11)
}
 0x2f2   :  { %621 = dma.vmem_to_hbm [thread:$0]  %s616_s9, 256, %s1053_s7, [#allocation4], %s906_s11, %s906_s11, %s907_s12  }
 0x2f3   :  { %903 = dma.done.wait [#allocation4], 256  }
 0x2f4   :  { %904 = vsyncadd [#allocation4], 4294967040 }
 0x2f5   :  { %625 = vsyncpa [#allocation3], 1 }
 0x2f6   :  { %626 = vsyncpa [#allocation6], 1 }
 0x2f7   :  { %627 = vsyncpa [#allocation9], 1 }
 0x2f8   :  { %628 = vsyncpa [#allocation4], 1 }

</bundles_post_ra>
